<compile_context>
chip_gen: v7x
topology: tpu7x:2x2x1
jax: 0.10.0
libtpu: 0.0.40
codegen_flags: <defaults>
</compile_context>

<pallas_src>
import functools

import jax
import jax.numpy as jnp
from jax.experimental import pallas as pl
from jax.experimental.pallas import tpu as pltpu

_SENTINEL = -50.0      # sigmoid(-50) ~ 2e-22 -> masked lanes contribute ~0 (<< smooth_dr)
_SMOOTH_DR = 1e-5


def _dice_focal_kernel(x_ref, y_ref, o_ref, inter_acc, denom_acc, focal_acc, *,
                       hw_v, hw_tile, hw_ragged):
    """grid = (row_blocks [parallel], hw_blocks [arbitrary / carried reduction])."""
    h = pl.program_id(1)

    @pl.when(h == 0)
    def _init():
        inter_acc[...] = jnp.zeros_like(inter_acc)
        denom_acc[...] = jnp.zeros_like(denom_acc)
        focal_acc[...] = jnp.zeros_like(focal_acc)

    x = x_ref[...].astype(jnp.float32)   # logits
    y = y_ref[...].astype(jnp.float32)   # binary targets

    if hw_ragged:
        # Only compiled in when hw_v % hw_tile != 0: the last hw block overhangs
        # the array and its out-of-bounds lanes hold garbage.  Replace them with
        # a sentinel logit / zero target (contribution ~2e-22 << smooth_dr)
        # instead of re-writing the inputs with jnp.pad in HBM.
        col = jax.lax.broadcasted_iota(jnp.int32, x.shape, 1) + h * hw_tile
        ok = col < hw_v
        x = jnp.where(ok, x, _SENTINEL)
        y = jnp.where(ok, y, 0.0)

    # sigmoid + log_sigmoid sharing a single exp (exact; fewer EUP pushes).
    t = jnp.exp(-jnp.abs(x))
    p = jnp.where(x >= 0.0, 1.0, t) / (1.0 + t)        # sigmoid(x)
    log_sig = jnp.minimum(x, 0.0) - jnp.log1p(t)       # log_sigmoid(x)

    # ---- Dice partial row-sums (fused denominator: one reduce for p + y) ----
    inter_acc[...] += jnp.sum(p * y, axis=-1, keepdims=True)
    denom_acc[...] += jnp.sum(p + y, axis=-1, keepdims=True)

    # ---- Focal (gamma=2): exp(2*log_sigmoid(-x*(2y-1))) == (y - p)^2 for binary y.
    # TODO(synk): soft / non-binary targets would need the explicit exp form.
    ce = x - x * y - log_sig                           # BCE-with-logits
    d = y - p
    focal_acc[...] += jnp.sum(d * d * ce, axis=-1, keepdims=True)

    @pl.when(h == pl.num_programs(1) - 1)
    def _finalize():
        # Pack the three per-row partial sums into lanes 0..2 of one aligned
        # (row_tile, 128) output block; the O(rows) dice/focal combine runs in XLA.
        lane = jax.lax.broadcasted_iota(jnp.int32, o_ref.shape, 1)
        o_ref[...] = jnp.where(
            lane == 0, inter_acc[...],
            jnp.where(lane == 1, denom_acc[...],
                      jnp.where(lane == 2, focal_acc[...], 0.0)))


def _round_up(a, b):
    return (a + b - 1) // b * b


def _block_budget_bytes():
    # 2 inputs x 2 pipeline buffers x budget must sit inside the scoped-VMEM
    # default: 16 MiB on v5e -> 2 MiB blocks; 32 MiB on v6e/v7x -> 4 MiB blocks.
    try:
        kind = jax.devices()[0].device_kind.lower()
    except Exception:
        kind = ""
    if any(tag in kind for tag in ("v6", "v7", "7x")):
        return 4 * 1024 * 1024
    return 2 * 1024 * 1024


def my_criterion(x, y, *, block_bytes=None):
    """x: logits (B, C, H, W); y: binary targets (B, C, H, W) -> scalar loss."""
    B, C, H, W = x.shape
    n_rows, hw = B * C, H * W

    x_item = jnp.dtype(x.dtype).itemsize
    y_item = jnp.dtype(y.dtype).itemsize
    itemsize = max(x_item, y_item)
    # Sublane packing: f32 row blocks must be multiples of 8, bf16 of 16, int8 of 32.
    row_align = max(8 * max(1, 4 // x_item), 8 * max(1, 4 // y_item))

    # Fold spatial positions into the row axis when B*C is too small to fill
    # native (sublane, 128) tiles / both v7x TensorCores.  Free reshape; the
    # per-(B,C) Dice sums are re-assembled from the fold groups in XLA.
    # (If hw is odd and B*C tiny, folding is skipped and the row axis may have
    #  a single block -> only one v7x TensorCore; rare corner, still correct.)
    fold = 1
    while (n_rows * fold < 2 * row_align and hw % (2 * fold) == 0
           and hw // (2 * fold) >= 128):
        fold *= 2
    R, Hw = n_rows * fold, hw // fold

    x2 = x.reshape(R, Hw)   # free views: no pad, no cast, no copy
    y2 = y.reshape(R, Hw)

    budget = block_bytes if block_bytes is not None else _block_budget_bytes()
    max_elems = max(budget // itemsize, row_align * 128)

    row_tile = R if R <= row_align else row_align
    if max(row_tile, row_align) * Hw * itemsize <= budget:
        # Whole spatial extent fits in one block: tile rows only.
        hw_tile = Hw
        if R > row_align:
            row_tile = min((max_elems // Hw) // row_align * row_align,
                           _round_up(R, row_align))
            row_tile = max(row_tile, row_align)
            if row_tile >= R:
                row_tile = R
    else:
        # Huge spatial extent (3-D volumes): tile the hw axis as well.  The
        # max(row_tile, row_align) accounts for sublane padding of short blocks.
        hw_tile = max(128, (max_elems // max(row_tile, row_align)) // 128 * 128)

    grid_r = int(pl.cdiv(R, row_tile))
    grid_h = int(pl.cdiv(Hw, hw_tile))
    hw_ragged = (hw_tile != Hw) and (Hw % hw_tile != 0)

    kernel = functools.partial(_dice_focal_kernel, hw_v=Hw, hw_tile=hw_tile,
                               hw_ragged=hw_ragged)

    partials = pl.pallas_call(
        kernel,
        out_shape=jax.ShapeDtypeStruct((grid_r * row_tile, 128), jnp.float32),
        grid_spec=pltpu.PrefetchScalarGridSpec(
            num_scalar_prefetch=0,
            grid=(grid_r, grid_h),
            in_specs=[
                pl.BlockSpec((row_tile, hw_tile), lambda r, h: (r, h)),
                pl.BlockSpec((row_tile, hw_tile), lambda r, h: (r, h)),
            ],
            out_specs=pl.BlockSpec((row_tile, 128), lambda r, h: (r, 0)),
            scratch_shapes=[
                pltpu.VMEM((row_tile, 1), jnp.float32),   # sum(p*y)    per view-row
                pltpu.VMEM((row_tile, 1), jnp.float32),   # sum(p+y)    per view-row
                pltpu.VMEM((row_tile, 1), jnp.float32),   # focal sums  per view-row
            ],
        ),
        compiler_params=pltpu.CompilerParams(
            dimension_semantics=("parallel", "arbitrary")),
    )(x2, y2)

    # Rows past R belong to an over-hanging last row block (garbage) -> drop
    # them before any cross-row reduction; everything below is O(rows) work.
    partials = partials[:R]
    inter, denom, focal = partials[:, 0], partials[:, 1], partials[:, 2]
    if fold > 1:
        inter = inter.reshape(n_rows, fold).sum(axis=1)
        denom = denom.reshape(n_rows, fold).sum(axis=1)
    dice = 1.0 - 2.0 * inter / (denom + _SMOOTH_DR)
    return jnp.mean(dice) + jnp.sum(focal) / float(n_rows * hw)


def _reference(x, y):
    """Pure-JAX reference matching MONAI DiceLoss + FocalLoss semantics."""
    x = x.astype(jnp.float32)
    y = y.astype(jnp.float32)
    p = jax.nn.sigmoid(x)
    inter = jnp.sum(p * y, axis=(2, 3))
    denom = jnp.sum(p, axis=(2, 3)) + jnp.sum(y, axis=(2, 3))
    dice = jnp.mean(1.0 - 2.0 * inter / (denom + 1e-5))
    ce = x - x * y - jax.nn.log_sigmoid(x)
    invprobs = jax.nn.log_sigmoid(-x * (y * 2.0 - 1.0))
    focal = jnp.mean(jnp.exp(invprobs * 2.0) * ce)
    return dice + focal


if __name__ == "__main__":
    key = jax.random.PRNGKey(0)

    def _check(shape, block_bytes=None):
        kx, ky = jax.random.split(jax.random.fold_in(key, sum(shape)))
        xs = jax.random.normal(kx, shape, dtype=jnp.float32)                 # logits
        ys = jax.random.bernoulli(ky, 0.3, shape).astype(jnp.float32)        # targets
        got = jax.block_until_ready(my_criterion(xs, ys, block_bytes=block_bytes))
        ref = jax.block_until_ready(_reference(xs, ys))
        assert jnp.allclose(got, ref, rtol=1e-4, atol=1e-5), (shape, got, ref)

    _check((2, 4, 16, 16))                            # spec shape (no masking needed)
    _check((1, 3, 16, 16))                            # few rows -> fold path
    _check((2, 4, 32, 48), block_bytes=16 * 1024)     # hw tiling + ragged last hw block
    _check((5, 4, 32, 48), block_bytes=16 * 1024)     # over-hanging last row block
    print("KERNEL_OK")
</pallas_src>

<mosaic_0001>
module attributes {stable_mosaic.version = 11 : i64} {
  func.func @_dice_focal_kernel(%arg0: i32, %arg1: i32, %arg2: memref<16x128xf32, #tpu.memory_space<vmem>>, %arg3: memref<16x128xf32, #tpu.memory_space<vmem>>, %arg4: memref<16x128xf32, #tpu.memory_space<vmem>>, %arg5: memref<16x1xf32, #tpu.memory_space<vmem>>, %arg6: memref<16x1xf32, #tpu.memory_space<vmem>>, %arg7: memref<16x1xf32, #tpu.memory_space<vmem>>) attributes {dimension_semantics = [#tpu.dimension_semantics<parallel>, #tpu.dimension_semantics<arbitrary>], iteration_bounds = array<i64: 1, 1>, scalar_prefetch = 0 : i64, scratch_operands = 3 : i64, tpu.core_type = #tpu.core_type<tc>, window_params = [{transform_indices = @transform_0, window_bounds = array<i64: 16, 128>}, {transform_indices = @transform_1, window_bounds = array<i64: 16, 128>}, {transform_indices = @transform_2, window_bounds = array<i64: 16, 128>}]} {
    %c0_i32 = arith.constant 0 : i32
    %0 = arith.cmpi eq, %arg1, %c0_i32 : i32
    %1 = arith.extui %0 : i1 to i32
    %c0_i32_0 = arith.constant 0 : i32
    %2 = arith.cmpi ne, %1, %c0_i32_0 : i32
    scf.if %2 {
      %cst_25 = arith.constant 0.000000e+00 : f32
      %46 = vector.broadcast %cst_25 : f32 to vector<16x1xf32>
      %c0_26 = arith.constant 0 : index
      %c0_27 = arith.constant 0 : index
      %47 = vector.load %arg5[%c0_26, %c0_27] : memref<16x1xf32, #tpu.memory_space<vmem>>, vector<16x1xf32>
      tpu.vector_store %arg5[%c0_26, %c0_27], %46 {strides = array<i32>} : memref<16x1xf32, #tpu.memory_space<vmem>>, vector<16x1xf32>,
      %cst_28 = arith.constant 0.000000e+00 : f32
      %48 = vector.broadcast %cst_28 : f32 to vector<16x1xf32>
      %c0_29 = arith.constant 0 : index
      %c0_30 = arith.constant 0 : index
      %49 = vector.load %arg6[%c0_29, %c0_30] : memref<16x1xf32, #tpu.memory_space<vmem>>, vector<16x1xf32>
      tpu.vector_store %arg6[%c0_29, %c0_30], %48 {strides = array<i32>} : memref<16x1xf32, #tpu.memory_space<vmem>>, vector<16x1xf32>,
      %cst_31 = arith.constant 0.000000e+00 : f32
      %50 = vector.broadcast %cst_31 : f32 to vector<16x1xf32>
      %c0_32 = arith.constant 0 : index
      %c0_33 = arith.constant 0 : index
      %51 = vector.load %arg7[%c0_32, %c0_33] : memref<16x1xf32, #tpu.memory_space<vmem>>, vector<16x1xf32>
      tpu.vector_store %arg7[%c0_32, %c0_33], %50 {strides = array<i32>} : memref<16x1xf32, #tpu.memory_space<vmem>>, vector<16x1xf32>,
    } else {
    }
    %c0 = arith.constant 0 : index
    %c0_1 = arith.constant 0 : index
    %3 = vector.load %arg2[%c0, %c0_1] : memref<16x128xf32, #tpu.memory_space<vmem>>, vector<16x128xf32>
    %c0_2 = arith.constant 0 : index
    %c0_3 = arith.constant 0 : index
    %4 = vector.load %arg3[%c0_2, %c0_3] : memref<16x128xf32, #tpu.memory_space<vmem>>, vector<16x128xf32>
    %5 = math.absf %3 : vector<16x128xf32>
    %cst = arith.constant 0.000000e+00 : f32
    %6 = vector.broadcast %cst : f32 to vector<16x128xf32>
    %7 = arith.subf %6, %5 : vector<16x128xf32>
    %8 = math.exp %7 : vector<16x128xf32>
    %cst_4 = arith.constant 0.000000e+00 : f32
    %9 = vector.broadcast %cst_4 : f32 to vector<16x128xf32>
    %10 = arith.cmpf oge, %3, %9 : vector<16x128xf32>
    %cst_5 = arith.constant 1.000000e+00 : f32
    %11 = vector.broadcast %cst_5 : f32 to vector<16x128xf32>
    %12 = arith.select %10, %11, %8 : vector<16x128xi1>, vector<16x128xf32>
    %cst_6 = arith.constant 1.000000e+00 : f32
    %13 = vector.broadcast %cst_6 : f32 to vector<16x128xf32>
    %14 = arith.addf %13, %8 : vector<16x128xf32>
    %15 = arith.divf %12, %14 : vector<16x128xf32>
    %cst_7 = arith.constant 0.000000e+00 : f32
    %16 = vector.broadcast %cst_7 : f32 to vector<16x128xf32>
    %17 = arith.minimumf %3, %16 : vector<16x128xf32>
    %18 = math.log1p %8 : vector<16x128xf32>
    %19 = arith.subf %17, %18 : vector<16x128xf32>
    %c0_8 = arith.constant 0 : index
    %c0_9 = arith.constant 0 : index
    %20 = vector.load %arg5[%c0_8, %c0_9] : memref<16x1xf32, #tpu.memory_space<vmem>>, vector<16x1xf32>
    %21 = arith.mulf %15, %4 : vector<16x128xf32>
    %cst_10 = arith.constant dense<0.000000e+00> : vector<16xf32>
    %22 = vector.multi_reduction <add>, %21, %cst_10 [1] : vector<16x128xf32> to vector<16xf32>
    %23 = vector.shape_cast %22 : vector<16xf32> to vector<16x1xf32>
    %24 = arith.addf %20, %23 : vector<16x1xf32>
    %c0_11 = arith.constant 0 : index
    %c0_12 = arith.constant 0 : index
    %25 = vector.load %arg5[%c0_11, %c0_12] : memref<16x1xf32, #tpu.memory_space<vmem>>, vector<16x1xf32>
    tpu.vector_store %arg5[%c0_11, %c0_12], %24 {strides = array<i32>} : memref<16x1xf32, #tpu.memory_space<vmem>>, vector<16x1xf32>,
    %c0_13 = arith.constant 0 : index
    %c0_14 = arith.constant 0 : index
    %26 = vector.load %arg6[%c0_13, %c0_14] : memref<16x1xf32, #tpu.memory_space<vmem>>, vector<16x1xf32>
    %27 = arith.addf %15, %4 : vector<16x128xf32>
    %cst_15 = arith.constant dense<0.000000e+00> : vector<16xf32>
    %28 = vector.multi_reduction <add>, %27, %cst_15 [1] : vector<16x128xf32> to vector<16xf32>
    %29 = vector.shape_cast %28 : vector<16xf32> to vector<16x1xf32>
    %30 = arith.addf %26, %29 : vector<16x1xf32>
    %c0_16 = arith.constant 0 : index
    %c0_17 = arith.constant 0 : index
    %31 = vector.load %arg6[%c0_16, %c0_17] : memref<16x1xf32, #tpu.memory_space<vmem>>, vector<16x1xf32>
    tpu.vector_store %arg6[%c0_16, %c0_17], %30 {strides = array<i32>} : memref<16x1xf32, #tpu.memory_space<vmem>>, vector<16x1xf32>,
    %32 = arith.mulf %3, %4 : vector<16x128xf32>
    %33 = arith.subf %3, %32 : vector<16x128xf32>
    %34 = arith.subf %33, %19 : vector<16x128xf32>
    %35 = arith.subf %4, %15 : vector<16x128xf32>
    %c0_18 = arith.constant 0 : index
    %c0_19 = arith.constant 0 : index
    %36 = vector.load %arg7[%c0_18, %c0_19] : memref<16x1xf32, #tpu.memory_space<vmem>>, vector<16x1xf32>
    %37 = arith.mulf %35, %35 : vector<16x128xf32>
    %38 = arith.mulf %37, %34 : vector<16x128xf32>
    %cst_20 = arith.constant dense<0.000000e+00> : vector<16xf32>
    %39 = vector.multi_reduction <add>, %38, %cst_20 [1] : vector<16x128xf32> to vector<16xf32>
    %40 = vector.shape_cast %39 : vector<16xf32> to vector<16x1xf32>
    %41 = arith.addf %36, %40 : vector<16x1xf32>
    %c0_21 = arith.constant 0 : index
    %c0_22 = arith.constant 0 : index
    %42 = vector.load %arg7[%c0_21, %c0_22] : memref<16x1xf32, #tpu.memory_space<vmem>>, vector<16x1xf32>
    tpu.vector_store %arg7[%c0_21, %c0_22], %41 {strides = array<i32>} : memref<16x1xf32, #tpu.memory_space<vmem>>, vector<16x1xf32>,
    %c0_i32_23 = arith.constant 0 : i32
    %43 = arith.cmpi eq, %arg1, %c0_i32_23 : i32
    %44 = arith.extui %43 : i1 to i32
    %c0_i32_24 = arith.constant 0 : i32
    %45 = arith.cmpi ne, %44, %c0_i32_24 : i32
    scf.if %45 {
      %46 = tpu.iota {dimensions = array<i32: 1>} : vector<16x128xi32>
      %c0_i32_25 = arith.constant 0 : i32
      %47 = vector.broadcast %c0_i32_25 : i32 to vector<16x128xi32>
      %48 = arith.cmpi eq, %46, %47 : vector<16x128xi32>
      %c0_26 = arith.constant 0 : index
      %c0_27 = arith.constant 0 : index
      %49 = vector.load %arg5[%c0_26, %c0_27] : memref<16x1xf32, #tpu.memory_space<vmem>>, vector<16x1xf32>
      %c1_i32 = arith.constant 1 : i32
      %50 = vector.broadcast %c1_i32 : i32 to vector<16x128xi32>
      %51 = arith.cmpi eq, %46, %50 : vector<16x128xi32>
      %c0_28 = arith.constant 0 : index
      %c0_29 = arith.constant 0 : index
      %52 = vector.load %arg6[%c0_28, %c0_29] : memref<16x1xf32, #tpu.memory_space<vmem>>, vector<16x1xf32>
      %c2_i32 = arith.constant 2 : i32
      %53 = vector.broadcast %c2_i32 : i32 to vector<16x128xi32>
      %54 = arith.cmpi eq, %46, %53 : vector<16x128xi32>
      %c0_30 = arith.constant 0 : index
      %c0_31 = arith.constant 0 : index
      %55 = vector.load %arg7[%c0_30, %c0_31] : memref<16x1xf32, #tpu.memory_space<vmem>>, vector<16x1xf32>
      %cst_32 = arith.constant 0.000000e+00 : f32
      %56 = vector.shape_cast %55 : vector<16x1xf32> to vector<16x1xf32>
      %57 = vector.broadcast %56 : vector<16x1xf32> to vector<16x128xf32>
      %58 = vector.broadcast %cst_32 : f32 to vector<16x128xf32>
      %59 = arith.select %54, %57, %58 : vector<16x128xi1>, vector<16x128xf32>
      %60 = vector.shape_cast %52 : vector<16x1xf32> to vector<16x1xf32>
      %61 = vector.broadcast %60 : vector<16x1xf32> to vector<16x128xf32>
      %62 = arith.select %51, %61, %59 : vector<16x128xi1>, vector<16x128xf32>
      %63 = vector.shape_cast %49 : vector<16x1xf32> to vector<16x1xf32>
      %64 = vector.broadcast %63 : vector<16x1xf32> to vector<16x128xf32>
      %65 = arith.select %48, %64, %62 : vector<16x128xi1>, vector<16x128xf32>
      %c0_33 = arith.constant 0 : index
      %c0_34 = arith.constant 0 : index
      %66 = vector.load %arg4[%c0_33, %c0_34] : memref<16x128xf32, #tpu.memory_space<vmem>>, vector<16x128xf32>
      tpu.vector_store %arg4[%c0_33, %c0_34], %65 {strides = array<i32>} : memref<16x128xf32, #tpu.memory_space<vmem>>, vector<16x128xf32>,
    } else {
    }
    return
  }
  func.func @transform_0(%arg0: i32, %arg1: i32) -> (i32, i32) {
    %c0_i32 = arith.constant 0 : i32
    return %arg0, %arg1 : i32, i32
  }
  func.func @transform_1(%arg0: i32, %arg1: i32) -> (i32, i32) {
    %c0_i32 = arith.constant 0 : i32
    return %arg0, %arg1 : i32, i32
  }
  func.func @transform_2(%arg0: i32, %arg1: i32) -> (i32, i32) {
    %c0_i32 = arith.constant 0 : i32
    %c0_i32_0 = arith.constant 0 : i32
    return %arg0, %c0_i32 : i32, i32
  }
}

</mosaic_0001>

<bundles_post_ra>
// kernel: tpu_custom_call.1
= control target key start
LH: loop header
LB: loop body
LE: loop exit
PB: predicated region body
PF: predicated region fallthrough
CT: control target
= control target key end

     0   :  { %7 = vsyncpa [#allocation6], 0  ;;  %s384_s0 = inlined_call_operand.hbm [shape: f32[16,128], index: 0, kind: input, shape index: {}]   ;;  %s385_s1 = inlined_call_operand.hbm [shape: f32[16,128], index: 1, kind: input, shape index: {}]   ;;  %s386_s2 = inlined_call_operand.hbm [shape: f32[16,128], index: 2, kind: output, shape index: {}]  }
   0x1   :  { %8 = vsyncpa [#allocation9], 0 }
   0x2   :  { %9 = vsyncpa [#allocation7], 0  ;;  %s305_s9 = smov [#allocation5]   ;;  %s233_s13 = scalar_lea.hbm %s384_s0, 256 }
   0x3   :  { %s15_s10 = sshll.u32 %s305_s9, 4  ;;  %p234_p0 = scmp.ne.s32.totalorder %s384_s0, %s233_s13  ;;  %s16_s10 = int_to_ptr.vmem [resolvable:$true] %s15_s10 }
   0x4   :  { %p237_p1 = scmp.lt.u32.totalorder %s233_s13, %s384_s0 }
   0x6   :  { %p239_p2 = pnand %p237_p1, %p234_p0 }
   0x8   :  { %242 = shalt.err (!%p239_p2)
}
   0x9   :  { %s243_s18 = scalar_lea.vmem %s16_s10, 256  ;;  %p248_p4 = scmp.lt.s32.totalorder %s16_s10, %s16_s10 }
   0xa   :  { %p244_p3 = scmp.ne.s32.totalorder %s16_s10, %s243_s18  ;;  %p249_p5 = scmp.lt.s32.totalorder %s243_s18, %s243_s18 }
   0xc   :  { %p250_p6 = por %p249_p5, %p248_p4 }
   0xe   :  { %p251_p7 = pnand %p250_p6, %p244_p3 }
  0x10   :  { %254 = shalt.err (!%p251_p7)
}
  0x11   :  { %s306_s19 = smov 128   ;;  %s307_s20 = smov 8  }
  0x12   :  { %21 = dma.hbm_to_vmem [thread:$0]  %s384_s0, 256, %s16_s10, [#allocation6], %s306_s19, %s306_s19, %s307_s20  }
  0x13   :  { %s308_s23 = smov [#allocation8]   ;;  %s255_s27 = scalar_lea.hbm %s385_s1, 256 }
  0x14   :  { %s27_s24 = sshll.u32 %s308_s23, 4  ;;  %p256_p8 = scmp.ne.s32.totalorder %s385_s1, %s255_s27  ;;  %s28_s24 = int_to_ptr.vmem [resolvable:$true] %s27_s24 }
  0x15   :  { %p259_p9 = scmp.lt.u32.totalorder %s255_s27, %s385_s1 }
  0x17   :  { %p261_p10 = pnand %p259_p9, %p256_p8 }
  0x19   :  { %264 = shalt.err (!%p261_p10)
}
  0x1a   :  { %s265_s4 = scalar_lea.vmem %s28_s24, 256  ;;  %p270_p12 = scmp.lt.s32.totalorder %s28_s24, %s28_s24 }
  0x1b   :  { %p266_p11 = scmp.ne.s32.totalorder %s28_s24, %s265_s4  ;;  %p271_p13 = scmp.lt.s32.totalorder %s265_s4, %s265_s4 }
  0x1d   :  { %p272_p0 = por %p271_p13, %p270_p12 }
  0x1f   :  { %p273_p1 = pnand %p272_p0, %p266_p11 }
  0x21   :  { %276 = shalt.err (!%p273_p1)
}
  0x22   :  { %33 = dma.hbm_to_vmem [thread:$0]  %s385_s1, 256, %s28_s24, [#allocation9], %s306_s19, %s306_s19, %s307_s20  }
  0x23   :  { %299 = dma.done.wait [#allocation6], 256  }
  0x24   :  { %300 = vsyncadd [#allocation6], 4294967040 }
  0x25   :  { %301 = dma.done.wait [#allocation9], 256  }
  0x26   :  { %302 = vsyncadd [#allocation9], 4294967040  ;;  %vm44_vm0 = vcmask 7168   ;;  %v309_v0 = vmov 0.0   ;;  %v51_v1 = vld [vmem:[#allocation5] sm:$0xff]  ;;  %v52_v2 = vld [vmem:[#allocation5 + $0x8] sm:$0xff] }
  0x27   :  { %47 = vst.msk [vmem:[#allocation3] sm:$0xff] %vm44_vm0, %v309_v0  ;;  %45 = vst.msk [vmem:[#allocation2] sm:$0xff] %vm44_vm0, %v309_v0  ;;  %v55_v3 = vand.u32 2147483647, %v51_v1  ;;  %v56_v4 = vand.u32 2147483647, %v52_v2 }
  0x28   :  { %46 = vst.msk [vmem:[#allocation2 + $0x8] sm:$0xff] %vm44_vm0, %v309_v0  ;;  %48 = vst.msk [vmem:[#allocation3 + $0x8] sm:$0xff] %vm44_vm0, %v309_v0  ;;  %v53_v15 = vld [vmem:[#allocation8] sm:$0xff]  ;;  %vm63_vm1 = vcmp.ge.f32.partialorder %v51_v1, 0.0  ;;  %v54_v18 = vld [vmem:[#allocation8 + $0x8] sm:$0xff]  ;;  %vm64_vm2 = vcmp.ge.f32.partialorder %v52_v2, 0.0 }
  0x29   :  { %49 = vst.msk [vmem:[#allocation4] sm:$0xff] %vm44_vm0, %v309_v0  ;;  %50 = vst.msk [vmem:[#allocation4 + $0x8] sm:$0xff] %vm44_vm0, %v309_v0  ;;  %v57_v5 = vsub.f32 0.0, %v55_v3  ;;  %v58_v6 = vsub.f32 0.0, %v56_v4  ;;  %v120_v20 = vmul.f32 %v53_v15, %v51_v1  ;;  %v121_v26 = vmul.f32 %v54_v18, %v52_v2  ;;  %s311_s1 = smov [#allocation10]  }
  0x2a   :  { %v73_v29 = vmin.f32 %v51_v1, 0.0  ;;  %v74_v33 = vmin.f32 %v52_v2, 0.0  ;;  %v310_v55 = vmov 0   ;;  %s199_s6 = sshll.u32 %s311_s1, 4  ;;  %s200_s6 = int_to_ptr.vmem [resolvable:$true] %s199_s6 }
  0x2b   :  { %v59_v7 = vmul.f32 1.442695, %v57_v5  ;;  %v61_v8 = vmul.f32 1.442695, %v58_v6  ;;  %v122_v32 = vsub.f32 %v51_v1, %v120_v20  ;;  %v123_v41 = vsub.f32 %v52_v2, %v121_v26  ;;  %220 = vset.pattern.permute.xlu1 %v310_v55  ;;  %219 = vset.pattern.permute.xlu0 %v310_v55  ;;  %s277_s7 = scalar_lea.vmem %s200_s6, 256  ;;  %p282_p3 = scmp.lt.s32.totalorder %s200_s6, %s200_s6 }
  0x2c   :  { %p278_p2 = scmp.ne.s32.totalorder %s200_s6, %s277_s7  ;;  %p283_p4 = scmp.lt.s32.totalorder %s277_s7, %s277_s7 }
  0x2d   :  { %221 = vpow2.f32 %v59_v7 }
  0x2e   :  { %223 = vpow2.f32 %v61_v8  ;;  %v108_v56 = vld [vmem:[#allocation3] sm:$0xff]  ;;  %v95_v8 = vld [vmem:[#allocation2] sm:$0xff]  ;;  %p284_p5 = por %p283_p4, %p282_p3 }
  0x2f   :  { %v109_v59 = vld [vmem:[#allocation3 + $0x8] sm:$0xff]  ;;  %v96_v0 = vld [vmem:[#allocation2 + $0x8] sm:$0xff] }
  0x30   :  { %v128_v60 = vld [vmem:[#allocation4] sm:$0xff]  ;;  %v129_v2 = vld [vmem:[#allocation4 + $0x8] sm:$0xff]  ;;  %p285_p6 = pnand %p284_p5, %p278_p2 }
  0x37   :  { %v222_v9 = vpop.eup %221 }
  0x38   :  { %v224_v10 = vpop.eup %223  ;;  %v67_v11 = vadd.f32 1.0, %v222_v9  ;;  %v78_v13 = vmul.f32 -0.5, %v222_v9  ;;  %v81_v17 = vand.u32 2147483647, %v222_v9  ;;  %v65_v19 = vsel %vm63_vm1, 1.0, %v222_v9 }
  0x39   :  { %v68_v12 = vadd.f32 1.0, %v224_v10  ;;  %v87_v14 = vmul.f32 -0.5, %v224_v10  ;;  %v90_v22 = vand.u32 2147483647, %v224_v10  ;;  %v66_v25 = vsel %vm64_vm2, 1.0, %v224_v10 }
  0x3a   :  { %225 = vrcp.f32 %v67_v11  ;;  %v79_v16 = vadd.f32 1.0, %v78_v13  ;;  %vm82_vm3 = vcmp.lt.f32.partialorder %v81_v17, 0.0004427343 }
  0x3b   :  { %227 = vlog2.f32 %v67_v11  ;;  %v88_v21 = vadd.f32 1.0, %v87_v14  ;;  %vm91_vm4 = vcmp.lt.f32.partialorder %v90_v22, 0.0004427343 }
  0x3c   :  { %229 = vrcp.f32 %v68_v12  ;;  %v80_v24 = vmul.f32 %v222_v9, %v79_v16  ;;  %v145_v16 = vlaneseq }
  0x3d   :  { %231 = vlog2.f32 %v68_v12  ;;  %v89_v34 = vmul.f32 %v224_v10, %v88_v21 }
  0x44   :  { %v226_v23 = vpop.eup %225 }
  0x45   :  { %v228_v27 = vpop.eup %227  ;;  %v70_v28 = vmul.f32 %v226_v23, %v65_v19 }
  0x46   :  { %v230_v30 = vpop.eup %229  ;;  %v77_v31 = vmul.f32 0.6931472, %v228_v27 }
  0x47   :  { %v232_v35 = vpop.eup %231  ;;  %v110_v36 = vadd.f32 %v70_v28, %v53_v15  ;;  %v126_v37 = vsub.f32 %v53_v15, %v70_v28  ;;  %v72_v38 = vmul.f32 %v230_v30, %v66_v25  ;;  %v97_v54 = vmul.f32 %v70_v28, %v53_v15 }
  0x48   :  { %v83_v39 = vsel %vm82_vm3, %v80_v24, %v77_v31  ;;  %v86_v40 = vmul.f32 0.6931472, %v232_v35 }
  0x49   :  { %112 = vadd.xlane.f32.xlu1 %v110_v36  ;;  %v93_v42 = vsub.f32 %v73_v29, %v83_v39  ;;  %v130_v43 = vmul.f32 %v126_v37, %v126_v37  ;;  %v111_v44 = vadd.f32 %v72_v38, %v54_v18  ;;  %v127_v45 = vsub.f32 %v54_v18, %v72_v38 }
  0x4a   :  { %v92_v46 = vsel %vm91_vm4, %v89_v34, %v86_v40  ;;  %v98_v52 = vmul.f32 %v72_v38, %v54_v18  ;;  %v146_v18 = vand.u32 127, %v145_v16 }
  0x4b   :  { %v124_v47 = vsub.f32 %v122_v32, %v93_v42  ;;  %v94_v48 = vsub.f32 %v74_v33, %v92_v46  ;;  %v131_v49 = vmul.f32 %v127_v45, %v127_v45 }
  0x4c   :  { %vm153_vm5 = vcmp.eq.s32.totalorder %v146_v18, 2  ;;  %vm150_vm6 = vcmp.eq.s32.totalorder %v146_v18, 1  ;;  %vm147_vm7 = vcmp.eq.s32.totalorder %v146_v18, 0 }
  0x4d   :  { %v132_v50 = vmul.f32 %v130_v43, %v124_v47  ;;  %114 = vadd.xlane.f32.xlu1 %v111_v44  ;;  %v125_v51 = vsub.f32 %v123_v41, %v94_v48 }
  0x4f   :  { %134 = vadd.xlane.f32.xlu0 %v132_v50  ;;  %v133_v53 = vmul.f32 %v131_v49, %v125_v51 }
  0x51   :  { %101 = vadd.xlane.f32.xlu1 %v98_v52 }
  0x53   :  { %136 = vadd.xlane.f32.xlu0 %v133_v53 }
  0x57   :  { %99 = vadd.xlane.f32.xlu0 %v97_v54 }
  0xd6   :  { %v113_v57 = vpop.xlane.xlu1 %112 }
  0xd7   :  { %v116_v58 = vadd.f32 %v113_v57, %v108_v56 }
  0xd9   :  { %118 = vst.msk [vmem:[#allocation3] sm:$0xff] %vm44_vm0, %v116_v58 }
  0xda   :  { %v115_v61 = vpop.xlane.xlu1 %114 }
  0xdb   :  { %v117_v62 = vadd.f32 %v115_v61, %v109_v59 }
  0xdc   :  { %v135_v63 = vpop.xlane.xlu0 %134 }
  0xdd   :  { %v138_v1 = vadd.f32 %v135_v63, %v128_v60  ;;  %119 = vst.msk [vmem:[#allocation3 + $0x8] sm:$0xff] %vm44_vm0, %v117_v62 }
  0xde   :  { %v102_v3 = vpop.xlane.xlu1 %101 }
  0xdf   :  { %140 = vst.msk [vmem:[#allocation4] sm:$0xff] %vm44_vm0, %v138_v1  ;;  %v104_v4 = vadd.f32 %v102_v3, %v96_v0 }
  0xe0   :  { %v137_v5 = vpop.xlane.xlu0 %136  ;;  %v151_v6 = vld [vmem:[#allocation3] sm:$0xff] }
  0xe1   :  { %v139_v7 = vadd.f32 %v137_v5, %v129_v2  ;;  %170 = vperm.xlu1 %220, %v151_v6   ;;  %107 = vst.msk [vmem:[#allocation2 + $0x8] sm:$0xff] %vm44_vm0, %v104_v4 }
  0xe3   :  { %141 = vst.msk [vmem:[#allocation4 + $0x8] sm:$0xff] %vm44_vm0, %v139_v7 }
  0xe4   :  { %v100_v9 = vpop.xlane.xlu0 %99  ;;  %v152_v10 = vld [vmem:[#allocation3 + $0x8] sm:$0xff] }
  0xe5   :  { %v103_v11 = vadd.f32 %v100_v9, %v95_v8  ;;  %175 = vperm.xlu1 %220, %v152_v10  }
  0xe6   :  { %v154_v12 = vld [vmem:[#allocation4] sm:$0xff] }
  0xe7   :  { %106 = vst.msk [vmem:[#allocation2] sm:$0xff] %vm44_vm0, %v103_v11  ;;  %158 = vperm.xlu0 %219, %v154_v12  }
  0xe8   :  { %v149_v15 = vld [vmem:[#allocation2 + $0x8] sm:$0xff] }
  0xea   :  { %v155_v14 = vld [vmem:[#allocation4 + $0x8] sm:$0xff] }
  0xee   :  { %v148_v13 = vld [vmem:[#allocation2] sm:$0xff] }
  0xef   :  { %182 = vperm.xlu1 %220, %v148_v13  }
  0xf3   :  { %163 = vperm.xlu1 %220, %v155_v14  }
  0xf7   :  { %187 = vperm.xlu1 %220, %v149_v15  }
 0x160   :  { %v171_v17 = vpop.permute.xlu1 %170 }
 0x164   :  { %v176_v20 = vpop.permute.xlu1 %175 }
 0x166   :  { %v159_v19 = vpop.permute.xlu0 %158 }
 0x167   :  { %v166_v21 = vsel %vm153_vm5, %v159_v19, 0.0 }
 0x168   :  { %v178_v22 = vsel %vm150_vm6, %v171_v17, %v166_v21 }
 0x16e   :  { %v183_v23 = vpop.permute.xlu1 %182 }
 0x16f   :  { %v190_v24 = vsel %vm147_vm7, %v183_v23, %v178_v22 }
 0x170   :  { %192 = vst [vmem:[#allocation10] sm:$0xff] %v190_v24 }
 0x172   :  { %v164_v25 = vpop.permute.xlu1 %163 }
 0x173   :  { %v167_v26 = vsel %vm153_vm5, %v164_v25, 0.0 }
 0x174   :  { %v179_v27 = vsel %vm150_vm6, %v176_v20, %v167_v26 }
 0x176   :  { %v188_v28 = vpop.permute.xlu1 %187 }
 0x177   :  { %v191_v29 = vsel %vm147_vm7, %v188_v28, %v179_v27 }
 0x178   :  { %193 = vst [vmem:[#allocation10 + $0x8] sm:$0xff] %v191_v29 }
 0x179   :  { %288 = shalt.err (!%p285_p6)
}
 0x17a   :  { %s289_s10 = scalar_lea.hbm %s386_s2, 256 }
 0x17b   :  { %p290_p7 = scmp.ne.s32.totalorder %s386_s2, %s289_s10  ;;  %p293_p8 = scmp.lt.u32.totalorder %s289_s10, %s386_s2 }
 0x17d   :  { %p295_p9 = pnand %p293_p8, %p290_p7 }
 0x17f   :  { %298 = shalt.err (!%p295_p9)
}
 0x180   :  { %205 = dma.vmem_to_hbm [thread:$0]  %s200_s6, 256, %s386_s2, [#allocation7], %s306_s19, %s306_s19, %s307_s20  }
 0x181   :  { %303 = dma.done.wait [#allocation7], 256  }
 0x182   :  { %304 = vsyncadd [#allocation7], 4294967040 }
 0x183   :  { %209 = vsyncpa [#allocation6], 1 }
 0x184   :  { %210 = vsyncpa [#allocation9], 1 }
 0x185   :  { %211 = vsyncpa [#allocation7], 1 }

</bundles_post_ra>
